<compile_context>
chip_gen: v7x
topology: tpu7x:2x2x1
jax: 0.10.0
libtpu: 0.0.40
codegen_flags: <defaults>
</compile_context>

<pallas_src>
import functools

import jax
import jax.numpy as jnp
from jax.experimental import pallas as pl
from jax.experimental.pallas import tpu as pltpu

BN_EPS = 1e-5


# ----------------------------------------------------------------------------
# Kernel
# ----------------------------------------------------------------------------
def _resblock_kernel(use_projection, tile_n, n_pad, inv_b,
                     x_ref, w1_ref, vec1_ref, w2_ref, vec2_ref, *rest):
    """Fused: [proj] + Linear -> BN -> ReLU -> Linear -> BN -> add -> ReLU.

    Grid axis 0 iterates over output-feature tiles of stage 2; stage 1 (full h)
    is computed once at j == 0 into the h_ref scratch.
    vec1 rows: 0=gamma1, 1=beta1.  vec2 rows: 0=gamma2, 1=beta2[, 2=proj bias].
    n_pad = number of zero-padded batch rows; inv_b = 1 / true_batch.
    """
    if use_projection:
        wp_ref, o_ref, h_ref = rest
    else:
        o_ref, h_ref = rest

    j = pl.program_id(0)

    def bn(h, gamma, beta):
        # Centered two-pass variance (accurate); zero pad rows contribute
        # exactly mu^2 each to the centered sum of squares -> subtract.
        mu = jnp.sum(h, axis=0, keepdims=True) * inv_b
        d = h - mu
        ss = jnp.sum(d * d, axis=0, keepdims=True)
        if n_pad:
            ss = ss - n_pad * (mu * mu)
        var = jnp.maximum(ss * inv_b, 0.0)
        s = gamma * jax.lax.rsqrt(var + BN_EPS)      # rsqrt -> EUP slot
        t = beta - mu * s
        return h * s + t                              # 2 VPU ops / element

    # ---- Stage 1 (once): h = rowmask(ReLU(BN1(x @ w1))) -> VMEM scratch ----
    @pl.when(j == 0)
    def _():
        x_mx = x_ref[...].astype(w1_ref.dtype)
        h = jnp.dot(x_mx, w1_ref[...], preferred_element_type=jnp.float32)
        v1 = vec1_ref[...]
        hn = jnp.maximum(bn(h, v1[0:1], v1[1:2]), 0.0)
        if n_pad:
            # Zero the padded batch rows so they stay out of BN2 statistics.
            row = jax.lax.broadcasted_iota(jnp.int32, (hn.shape[0], 1), 0)
            hn = jnp.where(row < (hn.shape[0] - n_pad), hn, 0.0)
        h_ref[...] = hn.astype(h_ref.dtype)

    # ---- Stage 2 (per output-feature tile, weights streamed / pipelined) ----
    v2 = vec2_ref[...]
    h2 = jnp.dot(h_ref[...], w2_ref[...], preferred_element_type=jnp.float32)
    h2 = bn(h2, v2[0:1], v2[1:2])

    if use_projection:
        x_mx = x_ref[...].astype(wp_ref.dtype)
        resid = jnp.dot(x_mx, wp_ref[...],
                        preferred_element_type=jnp.float32) + v2[2:3]
    else:
        start = pl.multiple_of(j * tile_n, tile_n)
        resid = x_ref[:, pl.ds(start, tile_n)]        # exact f32 identity slice

    # Lane-dense (multiple-of-128 wide) unmasked store.
    o_ref[...] = jnp.maximum(h2 + resid, 0.0).astype(o_ref.dtype)


# ----------------------------------------------------------------------------
# Parameter prep (pad to MXU-dense shapes, cast MXU weights, stack vectors)
# ----------------------------------------------------------------------------
def _round_up(n, m):
    return ((n + m - 1) // m) * m


def _pad2(a, rows, cols):
    r, c = a.shape
    return jnp.pad(a, ((0, rows - r), (0, cols - c)))


def prepare_params(params, *, use_projection, matmul_dtype=jnp.bfloat16,
                   feature_align=256):
    """One-time prep. feature_align=256 fills the v6e/v7x 256-wide MXU
    (use 128 on v5e). Linear biases b1/b2 are dropped (cancel under train BN);
    per-feature vectors are stacked so each stage needs a single small DMA."""
    in_dim, out_dim = params["w1"].shape
    K = _round_up(in_dim, feature_align)
    D = _round_up(out_dim, feature_align)

    def padvec(v):
        return jnp.pad(v.reshape(-1), (0, D - out_dim)).astype(jnp.float32)

    prep = {
        "in_dim": in_dim, "out_dim": out_dim, "K": K, "D": D,
        "mxu_dtype": matmul_dtype,
        "w1": _pad2(params["w1"], K, D).astype(matmul_dtype),
        "w2": _pad2(params["w2"], D, D).astype(matmul_dtype),
        "vec1": jnp.stack([padvec(params["g1"]), padvec(params["be1"])], axis=0),
    }
    rows2 = [padvec(params["g2"]), padvec(params["be2"])]
    if use_projection:
        prep["wp"] = _pad2(params["wp"], K, D).astype(matmul_dtype)
        rows2.append(padvec(params["bp"]))
    prep["vec2"] = jnp.stack(rows2, axis=0)
    return prep


def _vmem_limit(bytes_needed):
    try:
        cap = pltpu.get_tpu_info().vmem_capacity_bytes
    except Exception:
        cap = 64 << 20          # conservative (v7x per-TC capacity)
    return int(min(int(0.9 * cap), max(32 << 20, bytes_needed)))


# ----------------------------------------------------------------------------
# Wrapper
# ----------------------------------------------------------------------------
def residual_block(x, prep, *, use_projection, tile_n=None,
                   out_dtype=jnp.float32, x_is_padded=False, unpad_output=True):
    """x: (B, in_dim) f32 (or (B, K) if x_is_padded). Returns (B, out_dim)
    (or (B, D) padded if unpad_output=False, for stacked padded layouts)."""
    B, xdim = x.shape
    K, D = prep["K"], prep["D"]
    in_dim, out_dim = prep["in_dim"], prep["out_dim"]
    mdt = prep["mxu_dtype"]

    # Feature padding of x (skip when the caller keeps the padded layout).
    if x_is_padded:
        assert xdim == K
        x_p = x
    else:
        assert xdim == in_dim
        x_p = x if K == in_dim else jnp.pad(x, ((0, 0), (0, K - in_dim)))

    # Batch padding to a sublane-friendly multiple; BN stats stay exact
    # (inv_b = 1/true_B, pad rows masked + variance corrected in-kernel).
    b_align = 16 if mdt == jnp.bfloat16 else 8
    B_pad = _round_up(B, b_align)
    n_pad = B_pad - B
    if n_pad:
        x_p = jnp.pad(x_p, ((0, n_pad), (0, 0)))

    if tile_n is None:
        tile_n = 512 if D % 512 == 0 else (256 if D % 256 == 0 else 128)
    assert D % tile_n == 0
    grid = (D // tile_n,)

    const = lambda j: (0, 0)     # resident block (DMA'd once)
    stream = lambda j: (0, j)    # streamed column slabs (double-buffered)

    args = [x_p, prep["w1"], prep["vec1"], prep["w2"], prep["vec2"]]
    in_specs = [
        pl.BlockSpec((B_pad, K), const),
        pl.BlockSpec((K, D), const),
        pl.BlockSpec((2, D), const),
        pl.BlockSpec((D, tile_n), stream),
        pl.BlockSpec((prep["vec2"].shape[0], tile_n), stream),
    ]
    if use_projection:
        args.append(prep["wp"])
        in_specs.append(pl.BlockSpec((K, tile_n), stream))

    out_specs = pl.BlockSpec((B_pad, tile_n), stream)
    out_shape = jax.ShapeDtypeStruct((B_pad, D), out_dtype)

    # VMEM budget from the actual footprint, clamped to hardware capacity.
    mitem = jnp.dtype(mdt).itemsize
    resident = B_pad * K * 4 + K * D * mitem + 2 * D * 4 + B_pad * D * mitem
    per_tile = (D * tile_n * mitem + prep["vec2"].shape[0] * tile_n * 4
                + B_pad * tile_n * jnp.dtype(out_dtype).itemsize)
    if use_projection:
        per_tile += K * tile_n * mitem
    est = resident + 2 * per_tile + 4 * B_pad * D * 4   # + stage-1 f32 temporaries
    vmem_limit = _vmem_limit(int(1.25 * est))

    flops = 2 * B_pad * (K * D + D * D + (K * D if use_projection else 0))
    bytes_accessed = (sum(int(a.size) * a.dtype.itemsize for a in args)
                      + B_pad * D * jnp.dtype(out_dtype).itemsize)
    cost = pl.CostEstimate(flops=flops, transcendentals=2 * D,
                           bytes_accessed=bytes_accessed)

    kernel = functools.partial(_resblock_kernel, use_projection, tile_n,
                               n_pad, float(1.0 / B))

    out = pl.pallas_call(
        kernel,
        out_shape=out_shape,
        grid_spec=pltpu.PrefetchScalarGridSpec(
            num_scalar_prefetch=0,
            grid=grid,
            in_specs=in_specs,
            out_specs=out_specs,
            scratch_shapes=[pltpu.VMEM((B_pad, D), mdt)],
        ),
        compiler_params=pltpu.CompilerParams(
            dimension_semantics=("arbitrary",),   # j>0 tiles reuse h from j==0
            vmem_limit_bytes=vmem_limit),
        cost_estimate=cost,
    )(*args)

    if n_pad:
        out = out[:B]
    if unpad_output and D != out_dim:
        out = out[:, :out_dim]
    return out


# ----------------------------------------------------------------------------
# Init + pure-JAX reference (PyTorch semantics, train-mode BN, with biases)
# ----------------------------------------------------------------------------
def init_params(key, in_dim, out_dim):
    """Deterministic synthetic init. Linear weights stored (in, out)."""
    ks = jax.random.split(key, 6)
    bound1 = 1.0 / jnp.sqrt(in_dim)
    bound2 = 1.0 / jnp.sqrt(out_dim)
    return {
        "w1": jax.random.uniform(ks[0], (in_dim, out_dim), jnp.float32, -bound1, bound1),
        "b1": jax.random.uniform(ks[1], (1, out_dim), jnp.float32, -bound1, bound1),
        "g1": jnp.ones((1, out_dim), jnp.float32),
        "be1": jnp.zeros((1, out_dim), jnp.float32),
        "w2": jax.random.uniform(ks[2], (out_dim, out_dim), jnp.float32, -bound2, bound2),
        "b2": jax.random.uniform(ks[3], (1, out_dim), jnp.float32, -bound2, bound2),
        "g2": jnp.ones((1, out_dim), jnp.float32),
        "be2": jnp.zeros((1, out_dim), jnp.float32),
        "wp": jax.random.uniform(ks[4], (in_dim, out_dim), jnp.float32, -bound1, bound1),
        "bp": jax.random.uniform(ks[5], (1, out_dim), jnp.float32, -bound1, bound1),
    }


def residual_block_ref(x, p, *, use_projection):
    def bn(h, g, b):
        mu = jnp.mean(h, axis=0, keepdims=True)
        var = jnp.mean((h - mu) ** 2, axis=0, keepdims=True)
        return (h - mu) / jnp.sqrt(var + BN_EPS) * g + b

    residual = x @ p["wp"] + p["bp"] if use_projection else x
    h = x @ p["w1"] + p["b1"]
    h = jnp.maximum(bn(h, p["g1"], p["be1"]), 0.0)
    h = h @ p["w2"] + p["b2"]
    h = bn(h, p["g2"], p["be2"])
    return jnp.maximum(h + residual, 0.0)


# ----------------------------------------------------------------------------
# Demo / correctness check
# ----------------------------------------------------------------------------
if __name__ == "__main__":
    key = jax.random.PRNGKey(0)
    ks = jax.random.split(key, 6)

    # Case 1: projection residual (in_dim != out_dim).
    B, in_dim, out_dim = 8, 16, 32
    x = jax.random.normal(ks[0], (B, in_dim), jnp.float32)
    params = init_params(ks[1], in_dim, out_dim)
    ref = residual_block_ref(x, params, use_projection=True)

    # f32 MXU path: tight check of the fused semantics.
    prep_f32 = prepare_params(params, use_projection=True, matmul_dtype=jnp.float32)
    out_f32 = jax.block_until_ready(residual_block(x, prep_f32, use_projection=True))
    assert out_f32.shape == (B, out_dim)
    assert jnp.allclose(out_f32, ref, atol=2e-3, rtol=2e-3), "f32 projection mismatch"

    # bf16 MXU operands (v6e/v7x fast path); also exercises batch padding
    # (B=8 -> padded to 16) — loose sanity check only.
    prep_bf16 = prepare_params(params, use_projection=True, matmul_dtype=jnp.bfloat16)
    out_bf16 = jax.block_until_ready(residual_block(x, prep_bf16, use_projection=True))
    assert out_bf16.shape == (B, out_dim)
    assert jnp.allclose(out_bf16, ref, atol=1e-1, rtol=1e-1), "bf16 projection mismatch"

    # Case 2: identity residual (in_dim == out_dim) — no projection weight DMA.
    B2, dim2 = 8, 32
    x2 = jax.random.normal(ks[2], (B2, dim2), jnp.float32)
    params2 = init_params(ks[3], dim2, dim2)
    ref2 = residual_block_ref(x2, params2, use_projection=False)
    prep2 = prepare_params(params2, use_projection=False, matmul_dtype=jnp.float32)
    out2 = jax.block_until_ready(residual_block(x2, prep2, use_projection=False))
    assert out2.shape == (B2, dim2)
    assert jnp.allclose(out2, ref2, atol=2e-3, rtol=2e-3), "identity mismatch"

    # Case 3: multi-tile weight streaming (grid > 1) + odd batch (pad rows).
    B3, in3, out3 = 7, 48, 384
    x3 = jax.random.normal(ks[4], (B3, in3), jnp.float32)
    params3 = init_params(ks[5], in3, out3)
    ref3 = residual_block_ref(x3, params3, use_projection=True)
    prep3 = prepare_params(params3, use_projection=True, matmul_dtype=jnp.float32)
    out3_ = jax.block_until_ready(
        residual_block(x3, prep3, use_projection=True, tile_n=256))
    assert out3_.shape == (B3, out3)
    assert jnp.allclose(out3_, ref3, atol=3e-3, rtol=3e-3), "multi-tile mismatch"

    print("KERNEL_OK")
</pallas_src>

<mosaic_0001>
module attributes {stable_mosaic.version = 11 : i64} {
  func.func @_resblock_kernel(%arg0: i32, %arg1: memref<8x256xf32, #tpu.memory_space<vmem>>, %arg2: memref<256x256xf32, #tpu.memory_space<vmem>>, %arg3: memref<2x256xf32, #tpu.memory_space<vmem>>, %arg4: memref<256x256xf32, #tpu.memory_space<vmem>>, %arg5: memref<3x256xf32, #tpu.memory_space<vmem>>, %arg6: memref<256x256xf32, #tpu.memory_space<vmem>>, %arg7: memref<8x256xf32, #tpu.memory_space<vmem>>, %arg8: memref<8x256xf32, #tpu.memory_space<vmem>>) attributes {dimension_semantics = [#tpu.dimension_semantics<arbitrary>], iteration_bounds = array<i64: 1>, scalar_prefetch = 0 : i64, scratch_operands = 1 : i64, tpu.core_type = #tpu.core_type<tc>, window_params = [{pipeline_mode = #tpu.pipeline_mode<synchronous>, transform_indices = @transform_0, window_bounds = array<i64: 8, 256>}, {pipeline_mode = #tpu.pipeline_mode<synchronous>, transform_indices = @transform_1, window_bounds = array<i64: 256, 256>}, {pipeline_mode = #tpu.pipeline_mode<synchronous>, transform_indices = @transform_2, window_bounds = array<i64: 2, 256>}, {transform_indices = @transform_3, window_bounds = array<i64: 256, 256>}, {transform_indices = @transform_4, window_bounds = array<i64: 3, 256>}, {transform_indices = @transform_5, window_bounds = array<i64: 256, 256>}, {transform_indices = @transform_6, window_bounds = array<i64: 8, 256>}]} {
    %c0_i32 = arith.constant 0 : i32
    %0 = arith.cmpi eq, %arg0, %c0_i32 : i32
    %1 = arith.extui %0 : i1 to i32
    %c0_i32_0 = arith.constant 0 : i32
    %2 = arith.cmpi ne, %1, %c0_i32_0 : i32
    scf.if %2 {
      %c0_20 = arith.constant 0 : index
      %c0_21 = arith.constant 0 : index
      %42 = vector.load %arg1[%c0_20, %c0_21] : memref<8x256xf32, #tpu.memory_space<vmem>>, vector<8x256xf32>
      %c0_22 = arith.constant 0 : index
      %c0_23 = arith.constant 0 : index
      %43 = vector.load %arg2[%c0_22, %c0_23] : memref<256x256xf32, #tpu.memory_space<vmem>>, vector<256x256xf32>
      %cst_24 = arith.constant dense<0.000000e+00> : vector<8x256xf32>
      %44 = tpu.matmul %42, %43, %cst_24 {dimension_numbers = #tpu.dot_dimension_numbers<[1], [0], [0], [1], [0, 0, 1, 1], [], []>} : vector<8x256xf32>, vector<256x256xf32>, vector<8x256xf32> -> vector<8x256xf32>
      %c0_25 = arith.constant 0 : index
      %c0_26 = arith.constant 0 : index
      %45 = vector.load %arg3[%c0_25, %c0_26] : memref<2x256xf32, #tpu.memory_space<vmem>>, vector<2x256xf32>
      %46 = vector.extract_strided_slice %45 {offsets = [0, 0], sizes = [1, 256], strides = [1, 1]} : vector<2x256xf32> to vector<1x256xf32>
      %47 = vector.extract_strided_slice %45 {offsets = [1, 0], sizes = [1, 256], strides = [1, 1]} : vector<2x256xf32> to vector<1x256xf32>
      %cst_27 = arith.constant dense<0.000000e+00> : vector<256xf32>
      %48 = vector.multi_reduction <add>, %44, %cst_27 [0] : vector<8x256xf32> to vector<256xf32>
      %49 = vector.shape_cast %48 : vector<256xf32> to vector<1x256xf32>
      %cst_28 = arith.constant 1.250000e-01 : f32
      %50 = vector.broadcast %cst_28 : f32 to vector<1x256xf32>
      %51 = arith.mulf %49, %50 : vector<1x256xf32>
      %52 = vector.broadcast %51 : vector<1x256xf32> to vector<8x256xf32>
      %53 = arith.subf %44, %52 : vector<8x256xf32>
      %54 = arith.mulf %53, %53 : vector<8x256xf32>
      %cst_29 = arith.constant dense<0.000000e+00> : vector<256xf32>
      %55 = vector.multi_reduction <add>, %54, %cst_29 [0] : vector<8x256xf32> to vector<256xf32>
      %56 = vector.shape_cast %55 : vector<256xf32> to vector<1x256xf32>
      %cst_30 = arith.constant 1.250000e-01 : f32
      %57 = vector.broadcast %cst_30 : f32 to vector<1x256xf32>
      %58 = arith.mulf %56, %57 : vector<1x256xf32>
      %cst_31 = arith.constant 0.000000e+00 : f32
      %59 = vector.broadcast %cst_31 : f32 to vector<1x256xf32>
      %60 = arith.maximumf %58, %59 : vector<1x256xf32>
      %cst_32 = arith.constant 9.99999974E-6 : f32
      %61 = vector.broadcast %cst_32 : f32 to vector<1x256xf32>
      %62 = arith.addf %60, %61 : vector<1x256xf32>
      %63 = math.rsqrt %62 : vector<1x256xf32>
      %64 = arith.mulf %46, %63 : vector<1x256xf32>
      %65 = arith.mulf %51, %64 : vector<1x256xf32>
      %66 = arith.subf %47, %65 : vector<1x256xf32>
      %67 = vector.broadcast %64 : vector<1x256xf32> to vector<8x256xf32>
      %68 = arith.mulf %44, %67 : vector<8x256xf32>
      %69 = vector.broadcast %66 : vector<1x256xf32> to vector<8x256xf32>
      %70 = arith.addf %68, %69 : vector<8x256xf32>
      %cst_33 = arith.constant 0.000000e+00 : f32
      %71 = vector.broadcast %cst_33 : f32 to vector<8x256xf32>
      %72 = arith.maximumf %70, %71 : vector<8x256xf32>
      %c0_34 = arith.constant 0 : index
      %c0_35 = arith.constant 0 : index
      %73 = vector.load %arg8[%c0_34, %c0_35] : memref<8x256xf32, #tpu.memory_space<vmem>>, vector<8x256xf32>
      tpu.vector_store %arg8[%c0_34, %c0_35], %72 {strides = array<i32>} : memref<8x256xf32, #tpu.memory_space<vmem>>, vector<8x256xf32>,
    } else {
    }
    %c0 = arith.constant 0 : index
    %c0_1 = arith.constant 0 : index
    %3 = vector.load %arg5[%c0, %c0_1] : memref<3x256xf32, #tpu.memory_space<vmem>>, vector<3x256xf32>
    %c0_2 = arith.constant 0 : index
    %c0_3 = arith.constant 0 : index
    %4 = vector.load %arg8[%c0_2, %c0_3] : memref<8x256xf32, #tpu.memory_space<vmem>>, vector<8x256xf32>
    %c0_4 = arith.constant 0 : index
    %c0_5 = arith.constant 0 : index
    %5 = vector.load %arg4[%c0_4, %c0_5] : memref<256x256xf32, #tpu.memory_space<vmem>>, vector<256x256xf32>
    %cst = arith.constant dense<0.000000e+00> : vector<8x256xf32>
    %6 = tpu.matmul %4, %5, %cst {dimension_numbers = #tpu.dot_dimension_numbers<[1], [0], [0], [1], [0, 0, 1, 1], [], []>} : vector<8x256xf32>, vector<256x256xf32>, vector<8x256xf32> -> vector<8x256xf32>
    %7 = vector.extract_strided_slice %3 {offsets = [0, 0], sizes = [1, 256], strides = [1, 1]} : vector<3x256xf32> to vector<1x256xf32>
    %8 = vector.extract_strided_slice %3 {offsets = [1, 0], sizes = [1, 256], strides = [1, 1]} : vector<3x256xf32> to vector<1x256xf32>
    %cst_6 = arith.constant dense<0.000000e+00> : vector<256xf32>
    %9 = vector.multi_reduction <add>, %6, %cst_6 [0] : vector<8x256xf32> to vector<256xf32>
    %10 = vector.shape_cast %9 : vector<256xf32> to vector<1x256xf32>
    %cst_7 = arith.constant 1.250000e-01 : f32
    %11 = vector.broadcast %cst_7 : f32 to vector<1x256xf32>
    %12 = arith.mulf %10, %11 : vector<1x256xf32>
    %13 = vector.broadcast %12 : vector<1x256xf32> to vector<8x256xf32>
    %14 = arith.subf %6, %13 : vector<8x256xf32>
    %15 = arith.mulf %14, %14 : vector<8x256xf32>
    %cst_8 = arith.constant dense<0.000000e+00> : vector<256xf32>
    %16 = vector.multi_reduction <add>, %15, %cst_8 [0] : vector<8x256xf32> to vector<256xf32>
    %17 = vector.shape_cast %16 : vector<256xf32> to vector<1x256xf32>
    %cst_9 = arith.constant 1.250000e-01 : f32
    %18 = vector.broadcast %cst_9 : f32 to vector<1x256xf32>
    %19 = arith.mulf %17, %18 : vector<1x256xf32>
    %cst_10 = arith.constant 0.000000e+00 : f32
    %20 = vector.broadcast %cst_10 : f32 to vector<1x256xf32>
    %21 = arith.maximumf %19, %20 : vector<1x256xf32>
    %cst_11 = arith.constant 9.99999974E-6 : f32
    %22 = vector.broadcast %cst_11 : f32 to vector<1x256xf32>
    %23 = arith.addf %21, %22 : vector<1x256xf32>
    %24 = math.rsqrt %23 : vector<1x256xf32>
    %25 = arith.mulf %7, %24 : vector<1x256xf32>
    %26 = arith.mulf %12, %25 : vector<1x256xf32>
    %27 = arith.subf %8, %26 : vector<1x256xf32>
    %28 = vector.broadcast %25 : vector<1x256xf32> to vector<8x256xf32>
    %29 = arith.mulf %6, %28 : vector<8x256xf32>
    %30 = vector.broadcast %27 : vector<1x256xf32> to vector<8x256xf32>
    %31 = arith.addf %29, %30 : vector<8x256xf32>
    %c0_12 = arith.constant 0 : index
    %c0_13 = arith.constant 0 : index
    %32 = vector.load %arg1[%c0_12, %c0_13] : memref<8x256xf32, #tpu.memory_space<vmem>>, vector<8x256xf32>
    %c0_14 = arith.constant 0 : index
    %c0_15 = arith.constant 0 : index
    %33 = vector.load %arg6[%c0_14, %c0_15] : memref<256x256xf32, #tpu.memory_space<vmem>>, vector<256x256xf32>
    %cst_16 = arith.constant dense<0.000000e+00> : vector<8x256xf32>
    %34 = tpu.matmul %32, %33, %cst_16 {dimension_numbers = #tpu.dot_dimension_numbers<[1], [0], [0], [1], [0, 0, 1, 1], [], []>} : vector<8x256xf32>, vector<256x256xf32>, vector<8x256xf32> -> vector<8x256xf32>
    %35 = vector.extract_strided_slice %3 {offsets = [2, 0], sizes = [1, 256], strides = [1, 1]} : vector<3x256xf32> to vector<1x256xf32>
    %36 = vector.broadcast %35 : vector<1x256xf32> to vector<8x256xf32>
    %37 = arith.addf %34, %36 : vector<8x256xf32>
    %38 = arith.addf %31, %37 : vector<8x256xf32>
    %cst_17 = arith.constant 0.000000e+00 : f32
    %39 = vector.broadcast %cst_17 : f32 to vector<8x256xf32>
    %40 = arith.maximumf %38, %39 : vector<8x256xf32>
    %c0_18 = arith.constant 0 : index
    %c0_19 = arith.constant 0 : index
    %41 = vector.load %arg7[%c0_18, %c0_19] : memref<8x256xf32, #tpu.memory_space<vmem>>, vector<8x256xf32>
    tpu.vector_store %arg7[%c0_18, %c0_19], %40 {strides = array<i32>} : memref<8x256xf32, #tpu.memory_space<vmem>>, vector<8x256xf32>,
    return
  }
  func.func @transform_0(%arg0: i32) -> (i32, i32) {
    %c0_i32 = arith.constant 0 : i32
    %c0_i32_0 = arith.constant 0 : i32
    %c0_i32_1 = arith.constant 0 : i32
    return %c0_i32, %c0_i32_0 : i32, i32
  }
  func.func @transform_1(%arg0: i32) -> (i32, i32) {
    %c0_i32 = arith.constant 0 : i32
    %c0_i32_0 = arith.constant 0 : i32
    %c0_i32_1 = arith.constant 0 : i32
    return %c0_i32, %c0_i32_0 : i32, i32
  }
  func.func @transform_2(%arg0: i32) -> (i32, i32) {
    %c0_i32 = arith.constant 0 : i32
    %c0_i32_0 = arith.constant 0 : i32
    %c0_i32_1 = arith.constant 0 : i32
    return %c0_i32, %c0_i32_0 : i32, i32
  }
  func.func @transform_3(%arg0: i32) -> (i32, i32) {
    %c0_i32 = arith.constant 0 : i32
    %c0_i32_0 = arith.constant 0 : i32
    return %c0_i32, %arg0 : i32, i32
  }
  func.func @transform_4(%arg0: i32) -> (i32, i32) {
    %c0_i32 = arith.constant 0 : i32
    %c0_i32_0 = arith.constant 0 : i32
    return %c0_i32, %arg0 : i32, i32
  }
  func.func @transform_5(%arg0: i32) -> (i32, i32) {
    %c0_i32 = arith.constant 0 : i32
    %c0_i32_0 = arith.constant 0 : i32
    return %c0_i32, %arg0 : i32, i32
  }
  func.func @transform_6(%arg0: i32) -> (i32, i32) {
    %c0_i32 = arith.constant 0 : i32
    %c0_i32_0 = arith.constant 0 : i32
    return %c0_i32, %arg0 : i32, i32
  }
}

</mosaic_0001>

<bundles_post_ra>
// kernel: tpu_custom_call.1
= control target key start
LH: loop header
LB: loop body
LE: loop exit
PB: predicated region body
PF: predicated region fallthrough
CT: control target
= control target key end

     0   :  { %11 = vsyncpa [#allocation4], 0  ;;  %s1242_s0 = inlined_call_operand.hbm [shape: f32[8,256], index: 0, kind: input, shape index: {}]   ;;  %s1243_s1 = inlined_call_operand.hbm [shape: f32[256,256], index: 1, kind: input, shape index: {}]   ;;  %s1244_s2 = inlined_call_operand.vmem [shape: f32[2,256], index: 2, kind: input, shape index: {}]   ;;  %s1245_s3 = inlined_call_operand.hbm [shape: f32[256,256], index: 3, kind: input, shape index: {}]   ;;  %s1246_s4 = inlined_call_operand.vmem [shape: f32[3,256], index: 4, kind: input, shape index: {}]   ;;  %s1247_s5 = inlined_call_operand.hbm [shape: f32[256,256], index: 5, kind: input, shape index: {}]   ;;  %s1248_s6 = inlined_call_operand.hbm [shape: f32[8,256], index: 6, kind: output, shape index: {}]  }
   0x1   :  { %12 = vsyncpa [#allocation7], 0 }
   0x2   :  { %13 = vsyncpa [#allocation10], 0 }
   0x3   :  { %14 = vsyncpa [#allocation5], 0  ;;  %s1066_s21 = smov [#allocation6]   ;;  %s948_s25 = scalar_lea.hbm %s1243_s1, 8192 }
   0x4   :  { %s30_s22 = sshll.u32 %s1066_s21, 4  ;;  %p949_p0 = scmp.ne.s32.totalorder %s1243_s1, %s948_s25  ;;  %s31_s22 = int_to_ptr.vmem [resolvable:$true] %s30_s22 }
   0x5   :  { %p952_p1 = scmp.lt.u32.totalorder %s948_s25, %s1243_s1 }
   0x7   :  { %p954_p2 = pnand %p952_p1, %p949_p0 }
   0x9   :  { %957 = shalt.err (!%p954_p2)
}
   0xa   :  { %s958_s30 = scalar_lea.vmem %s31_s22, 8192  ;;  %p963_p4 = scmp.lt.s32.totalorder %s31_s22, %s31_s22 }
   0xb   :  { %p959_p3 = scmp.ne.s32.totalorder %s31_s22, %s958_s30  ;;  %p964_p5 = scmp.lt.s32.totalorder %s958_s30, %s958_s30 }
   0xd   :  { %p965_p6 = por %p964_p5, %p963_p4 }
   0xf   :  { %p966_p7 = pnand %p965_p6, %p959_p3 }
  0x11   :  { %969 = shalt.err (!%p966_p7)
}
  0x12   :  { %s1067_s7 = smov 256   ;;  %s1068_s8 = smov 16  }
  0x13   :  { %36 = dma.hbm_to_vmem [thread:$0]  %s1243_s1, 8192, %s31_s22, [#allocation7], %s1067_s7, %s1067_s7, %s1068_s8  }
  0x14   :  { %s1069_s11 = smov [#allocation3]   ;;  %s1070_s13 = smov [#allocation8]  }
  0x15   :  { %s21_s12 = sshll.u32 %s1069_s11, 4  ;;  %s44_s14 = sshll.u32 %s1070_s13, 4  ;;  %s22_s12 = int_to_ptr.vmem [resolvable:$true] %s21_s12  ;;  %s45_s14 = int_to_ptr.vmem [resolvable:$true] %s44_s14 }
  0x16   :  { %s970_s17 = scalar_lea.hbm %s1242_s0, 256 }
  0x17   :  { %p971_p8 = scmp.ne.s32.totalorder %s1242_s0, %s970_s17  ;;  %p974_p9 = scmp.lt.u32.totalorder %s970_s17, %s1242_s0 }
  0x19   :  { %p976_p10 = pnand %p974_p9, %p971_p8 }
  0x1b   :  { %979 = shalt.err (!%p976_p10)
}
  0x1c   :  { %s980_s1 = scalar_lea.vmem %s22_s12, 256  ;;  %p985_p12 = scmp.lt.s32.totalorder %s22_s12, %s22_s12 }
  0x1d   :  { %p981_p11 = scmp.ne.s32.totalorder %s22_s12, %s980_s1  ;;  %p986_p13 = scmp.lt.s32.totalorder %s980_s1, %s980_s1 }
  0x1f   :  { %p987_p0 = por %p986_p13, %p985_p12 }
  0x21   :  { %p988_p1 = pnand %p987_p0, %p981_p11 }
  0x23   :  { %991 = shalt.err (!%p988_p1)
}
  0x24   :  { %24 = dma.hbm_to_vmem [thread:$0]  %s1242_s0, 256, %s22_s12, [#allocation4]  }
  0x25   :  { %s992_s26 = scalar_lea.hbm %s1245_s3, 8192 }
  0x26   :  { %p993_p2 = scmp.ne.s32.totalorder %s1245_s3, %s992_s26  ;;  %p996_p3 = scmp.lt.u32.totalorder %s992_s26, %s1245_s3 }
  0x28   :  { %p998_p4 = pnand %p996_p3, %p993_p2 }
  0x2a   :  { %1001 = shalt.err (!%p998_p4)
}
  0x2b   :  { %s1002_s9 = scalar_lea.vmem %s45_s14, 8192  ;;  %p1007_p6 = scmp.lt.s32.totalorder %s45_s14, %s45_s14 }
  0x2c   :  { %p1003_p5 = scmp.ne.s32.totalorder %s45_s14, %s1002_s9  ;;  %p1008_p7 = scmp.lt.s32.totalorder %s1002_s9, %s1002_s9 }
  0x2e   :  { %p1009_p8 = por %p1008_p7, %p1007_p6 }
  0x30   :  { %p1010_p9 = pnand %p1009_p8, %p1003_p5 }
  0x32   :  { %1013 = shalt.err (!%p1010_p9)
}
  0x33   :  { %50 = dma.hbm_to_vmem [thread:$0]  %s1245_s3, 8192, %s45_s14, [#allocation7], %s1067_s7, %s1067_s7, %s1068_s8  }
  0x34   :  { %s1071_s11 = smov [#allocation9]   ;;  %s1014_s16 = scalar_lea.hbm %s1247_s5, 8192 }
  0x35   :  { %s58_s12 = sshll.u32 %s1071_s11, 4  ;;  %p1015_p10 = scmp.ne.s32.totalorder %s1247_s5, %s1014_s16  ;;  %s59_s12 = int_to_ptr.vmem [resolvable:$true] %s58_s12 }
  0x36   :  { %p1018_p11 = scmp.lt.u32.totalorder %s1014_s16, %s1247_s5 }
  0x38   :  { %p1020_p12 = pnand %p1018_p11, %p1015_p10 }
  0x3a   :  { %1023 = shalt.err (!%p1020_p12)
}
  0x3b   :  { %s1024_s21 = scalar_lea.vmem %s59_s12, 8192  ;;  %p1029_p0 = scmp.lt.s32.totalorder %s59_s12, %s59_s12 }
  0x3c   :  { %p1025_p13 = scmp.ne.s32.totalorder %s59_s12, %s1024_s21  ;;  %p1030_p1 = scmp.lt.s32.totalorder %s1024_s21, %s1024_s21 }
  0x3e   :  { %p1031_p2 = por %p1030_p1, %p1029_p0 }
  0x40   :  { %p1032_p3 = pnand %p1031_p2, %p1025_p13 }
  0x42   :  { %1035 = shalt.err (!%p1032_p3)
}
  0x43   :  { %64 = dma.hbm_to_vmem [thread:$0]  %s1247_s5, 8192, %s59_s12, [#allocation10], %s1067_s7, %s1067_s7, %s1068_s8  }
  0x44   :  { %1058 = dma.done.wait [#allocation4], 256  }
  0x45   :  { %1059 = vsyncadd [#allocation4], 4294967040 }
  0x46   :  { %1060 = dma.done.wait [#allocation7], 16384  }
  0x47   :  { %1061 = vsyncadd [#allocation7], 4294950912 }
  0x48   :  { %1062 = dma.done.wait [#allocation10], 8192  }
  0x49   :  { %1063 = vsyncadd [#allocation10], 4294959104  ;;  %v84_v0 = vld [vmem:[#allocation6 + $0x8] sm:$0xff]  ;;  %v86_v1 = vld [vmem:[#allocation6 + $0x18] sm:$0xff] }
  0x4a   :  { %v83_v2 = vld [vmem:[#allocation6] sm:$0xff]  ;;  %v740_v3 = vpack.c.bf16 %v86_v1, %v84_v0  ;;  %v85_v4 = vld [vmem:[#allocation6 + $0x10] sm:$0xff]  ;;  %v88_v5 = vld [vmem:[#allocation6 + $0x28] sm:$0xff] }
  0x4b   :  { %v90_v6 = vld [vmem:[#allocation6 + $0x38] sm:$0xff]  ;;  %v742_v7 = vpack.c.bf16 %v85_v4, %v83_v2  ;;  %v87_v9 = vld [vmem:[#allocation6 + $0x20] sm:$0xff]  ;;  %v89_v10 = vld [vmem:[#allocation6 + $0x30] sm:$0xff] }
  0x4c   :  { %v744_v8 = vpack.c.bf16 %v90_v6, %v88_v5  ;;  %v92_v11 = vld [vmem:[#allocation6 + $0x48] sm:$0xff]  ;;  %741 = vmatprep.subr.bf16.mxu0 %v740_v3  ;;  %v94_v12 = vld [vmem:[#allocation6 + $0x58] sm:$0xff]  ;;  %v746_v13 = vpack.c.bf16 %v89_v10, %v87_v9  ;;  %v91_v15 = vld [vmem:[#allocation6 + $0x40] sm:$0xff] }
  0x4d   :  { %743 = vmatpush1.bf16.msra.mxu0 %v742_v7  ;;  %v748_v14 = vpack.c.bf16 %v94_v12, %v92_v11  ;;  %v93_v16 = vld [vmem:[#allocation6 + $0x50] sm:$0xff]  ;;  %v96_v17 = vld [vmem:[#allocation6 + $0x68] sm:$0xff]  ;;  %v98_v18 = vld [vmem:[#allocation6 + $0x78] sm:$0xff] }
  0x4e   :  { %745 = vmatprep.subr.bf16.mxu0 %v744_v8  ;;  %v750_v19 = vpack.c.bf16 %v93_v16, %v91_v15  ;;  %v752_v20 = vpack.c.bf16 %v98_v18, %v96_v17  ;;  %v95_v21 = vld [vmem:[#allocation6 + $0x60] sm:$0xff]  ;;  %v97_v22 = vld [vmem:[#allocation6 + $0x70] sm:$0xff]  ;;  %v100_v23 = vld [vmem:[#allocation6 + $0x88] sm:$0xff] }
  0x4f   :  { %v102_v24 = vld [vmem:[#allocation6 + $0x98] sm:$0xff]  ;;  %v754_v25 = vpack.c.bf16 %v97_v22, %v95_v21  ;;  %v99_v27 = vld [vmem:[#allocation6 + $0x80] sm:$0xff]  ;;  %v101_v28 = vld [vmem:[#allocation6 + $0x90] sm:$0xff] }
  0x50   :  { %v756_v26 = vpack.c.bf16 %v102_v24, %v100_v23  ;;  %v104_v29 = vld [vmem:[#allocation6 + $0xa8] sm:$0xff]  ;;  %v106_v30 = vld [vmem:[#allocation6 + $0xb8] sm:$0xff]  ;;  %v758_v31 = vpack.c.bf16 %v101_v28, %v99_v27  ;;  %v103_v33 = vld [vmem:[#allocation6 + $0xa0] sm:$0xff] }
  0x51   :  { %747 = vmatpush1.bf16.msra.mxu0 %v746_v13  ;;  %v760_v32 = vpack.c.bf16 %v106_v30, %v104_v29  ;;  %v105_v34 = vld [vmem:[#allocation6 + $0xb0] sm:$0xff]  ;;  %v108_v35 = vld [vmem:[#allocation6 + $0xc8] sm:$0xff]  ;;  %v110_v36 = vld [vmem:[#allocation6 + $0xd8] sm:$0xff] }
  0x52   :  { %749 = vmatprep.subr.bf16.mxu0 %v748_v14  ;;  %v762_v37 = vpack.c.bf16 %v105_v34, %v103_v33  ;;  %v764_v38 = vpack.c.bf16 %v110_v36, %v108_v35  ;;  %v107_v39 = vld [vmem:[#allocation6 + $0xc0] sm:$0xff]  ;;  %v109_v40 = vld [vmem:[#allocation6 + $0xd0] sm:$0xff]  ;;  %v1166_v41 = vld [vmem:[#allocation3 + $0x8] sm:$0xff] }
  0x53   :  { %v112_v42 = vld [vmem:[#allocation6 + $0xe8] sm:$0xff]  ;;  %v114_v43 = vld [vmem:[#allocation6 + $0xf8] sm:$0xff]  ;;  %211 = vmatprep.mubr.f32.mxu0 %v1166_v41  ;;  %v766_v44 = vpack.c.bf16 %v109_v40, %v107_v39  ;;  %v111_v46 = vld [vmem:[#allocation6 + $0xe0] sm:$0xff] }
  0x54   :  { %v768_v45 = vpack.c.bf16 %v114_v43, %v112_v42  ;;  %v113_v47 = vld [vmem:[#allocation6 + $0xf0] sm:$0xff]  ;;  %v116_v48 = vld [vmem:[#allocation6 + $0x108] sm:$0xff]  ;;  %v118_v49 = vld [vmem:[#allocation6 + $0x118] sm:$0xff] }
  0x55   :  { %751 = vmatpush1.bf16.msra.mxu0 %v750_v19  ;;  %v770_v50 = vpack.c.bf16 %v113_v47, %v111_v46  ;;  %v772_v51 = vpack.c.bf16 %v118_v49, %v116_v48  ;;  %v115_v52 = vld [vmem:[#allocation6 + $0x100] sm:$0xff]  ;;  %v117_v53 = vld [vmem:[#allocation6 + $0x110] sm:$0xff]  ;;  %v120_v54 = vld [vmem:[#allocation6 + $0x128] sm:$0xff] }
  0x56   :  { %753 = vmatprep.subr.bf16.mxu0 %v752_v20  ;;  %v122_v55 = vld [vmem:[#allocation6 + $0x138] sm:$0xff]  ;;  %v774_v56 = vpack.c.bf16 %v117_v53, %v115_v52  ;;  %v119_v58 = vld [vmem:[#allocation6 + $0x120] sm:$0xff]  ;;  %v121_v59 = vld [vmem:[#allocation6 + $0x130] sm:$0xff] }
  0x57   :  { %v776_v57 = vpack.c.bf16 %v122_v55, %v120_v54  ;;  %v124_v60 = vld [vmem:[#allocation6 + $0x148] sm:$0xff]  ;;  %v126_v61 = vld [vmem:[#allocation6 + $0x158] sm:$0xff]  ;;  %v778_v62 = vpack.c.bf16 %v121_v59, %v119_v58  ;;  %v123_v0 = vld [vmem:[#allocation6 + $0x140] sm:$0xff] }
  0x58   :  { %v780_v63 = vpack.c.bf16 %v126_v61, %v124_v60  ;;  %v125_v1 = vld [vmem:[#allocation6 + $0x150] sm:$0xff]  ;;  %v128_v2 = vld [vmem:[#allocation6 + $0x168] sm:$0xff]  ;;  %v130_v3 = vld [vmem:[#allocation6 + $0x178] sm:$0xff] }
  0x59   :  { %755 = vmatpush1.bf16.msra.mxu0 %v754_v25  ;;  %v782_v4 = vpack.c.bf16 %v125_v1, %v123_v0  ;;  %v784_v5 = vpack.c.bf16 %v130_v3, %v128_v2  ;;  %v127_v6 = vld [vmem:[#allocation6 + $0x160] sm:$0xff]  ;;  %v129_v7 = vld [vmem:[#allocation6 + $0x170] sm:$0xff]  ;;  %v132_v8 = vld [vmem:[#allocation6 + $0x188] sm:$0xff] }
  0x5a   :  { %757 = vmatprep.subr.bf16.mxu0 %v756_v26  ;;  %v134_v9 = vld [vmem:[#allocation6 + $0x198] sm:$0xff]  ;;  %v786_v10 = vpack.c.bf16 %v129_v7, %v127_v6  ;;  %v131_v12 = vld [vmem:[#allocation6 + $0x180] sm:$0xff]  ;;  %v133_v13 = vld [vmem:[#allocation6 + $0x190] sm:$0xff] }
  0x5b   :  { %v788_v11 = vpack.c.bf16 %v134_v9, %v132_v8  ;;  %v136_v14 = vld [vmem:[#allocation6 + $0x1a8] sm:$0xff]  ;;  %v138_v15 = vld [vmem:[#allocation6 + $0x1b8] sm:$0xff]  ;;  %v790_v16 = vpack.c.bf16 %v133_v13, %v131_v12  ;;  %v135_v18 = vld [vmem:[#allocation6 + $0x1a0] sm:$0xff] }
  0x5c   :  { %v792_v17 = vpack.c.bf16 %v138_v15, %v136_v14  ;;  %v137_v19 = vld [vmem:[#allocation6 + $0x1b0] sm:$0xff]  ;;  %v140_v20 = vld [vmem:[#allocation6 + $0x1c8] sm:$0xff]  ;;  %v142_v21 = vld [vmem:[#allocation6 + $0x1d8] sm:$0xff] }
  0x5d   :  { %759 = vmatpush1.bf16.msra.mxu0 %v758_v31  ;;  %v794_v22 = vpack.c.bf16 %v137_v19, %v135_v18  ;;  %v796_v23 = vpack.c.bf16 %v142_v21, %v140_v20  ;;  %v139_v24 = vld [vmem:[#allocation6 + $0x1c0] sm:$0xff]  ;;  %v141_v25 = vld [vmem:[#allocation6 + $0x1d0] sm:$0xff]  ;;  %v144_v26 = vld [vmem:[#allocation6 + $0x1e8] sm:$0xff] }
  0x5e   :  { %761 = vmatprep.subr.bf16.mxu0 %v760_v32  ;;  %v146_v27 = vld [vmem:[#allocation6 + $0x1f8] sm:$0xff]  ;;  %v798_v28 = vpack.c.bf16 %v141_v25, %v139_v24  ;;  %v143_v30 = vld [vmem:[#allocation6 + $0x1e0] sm:$0xff]  ;;  %v145_v31 = vld [vmem:[#allocation6 + $0x1f0] sm:$0xff] }
  0x5f   :  { %v800_v29 = vpack.c.bf16 %v146_v27, %v144_v26  ;;  %v802_v32 = vpack.c.bf16 %v145_v31, %v143_v30  ;;  %v1169_v33 = vld [vmem:[#allocation3] sm:$0xff]  ;;  %v334_v34 = vld [vmem:[#allocation8 + $0x8] sm:$0xff]  ;;  %v336_v35 = vld [vmem:[#allocation8 + $0x18] sm:$0xff] }
  0x60   :  { %v804_v36 = vpack.c.bf16 %v336_v35, %v334_v34  ;;  %v338_v40 = vld [vmem:[#allocation8 + $0x28] sm:$0xff]  ;;  %v340_v42 = vld [vmem:[#allocation8 + $0x38] sm:$0xff]  ;;  %v345_v55 = vld [vmem:[#allocation8 + $0x60] sm:$0xff] }
  0x61   :  { %763 = vmatpush1.bf16.msra.mxu0 %v762_v37  ;;  %v333_v37 = vld [vmem:[#allocation8] sm:$0xff]  ;;  %v808_v43 = vpack.c.bf16 %v340_v42, %v338_v40  ;;  %v342_v47 = vld [vmem:[#allocation8 + $0x48] sm:$0xff]  ;;  %v344_v48 = vld [vmem:[#allocation8 + $0x58] sm:$0xff] }
  0x62   :  { %765 = vmatprep.subr.bf16.mxu0 %v764_v38  ;;  %v335_v38 = vld [vmem:[#allocation8 + $0x10] sm:$0xff]  ;;  %805 = vmatprep.subr.bf16.mxu1 %v804_v36  ;;  %v812_v49 = vpack.c.bf16 %v344_v48, %v342_v47  ;;  %v346_v52 = vld [vmem:[#allocation8 + $0x68] sm:$0xff]  ;;  %v348_v53 = vld [vmem:[#allocation8 + $0x78] sm:$0xff] }
  0x63   :  { %v806_v39 = vpack.c.bf16 %v335_v38, %v333_v37  ;;  %v816_v54 = vpack.c.bf16 %v348_v53, %v346_v52  ;;  %v350_v58 = vld [vmem:[#allocation8 + $0x88] sm:$0xff]  ;;  %v352_v59 = vld [vmem:[#allocation8 + $0x98] sm:$0xff]  ;;  %v349_v61 = vld [vmem:[#allocation8 + $0x80] sm:$0xff] }
  0x64   :  { %v820_v60 = vpack.c.bf16 %v352_v59, %v350_v58  ;;  %v354_v0 = vld [vmem:[#allocation8 + $0xa8] sm:$0xff]  ;;  %v356_v1 = vld [vmem:[#allocation8 + $0xb8] sm:$0xff]  ;;  %v353_v3 = vld [vmem:[#allocation8 + $0xa0] sm:$0xff] }
  0x65   :  { %767 = vmatpush1.bf16.msra.mxu0 %v766_v44  ;;  %807 = vmatpush1.bf16.msra.mxu1 %v806_v39  ;;  %v337_v44 = vld [vmem:[#allocation8 + $0x20] sm:$0xff]  ;;  %v824_v2 = vpack.c.bf16 %v356_v1, %v354_v0  ;;  %v358_v6 = vld [vmem:[#allocation8 + $0xc8] sm:$0xff]  ;;  %v360_v7 = vld [vmem:[#allocation8 + $0xd8] sm:$0xff] }
  0x66   :  { %769 = vmatprep.subr.bf16.mxu0 %v768_v45  ;;  %v339_v45 = vld [vmem:[#allocation8 + $0x30] sm:$0xff]  ;;  %809 = vmatprep.subr.bf16.mxu1 %v808_v43  ;;  %v828_v8 = vpack.c.bf16 %v360_v7, %v358_v6  ;;  %v357_v9 = vld [vmem:[#allocation8 + $0xc0] sm:$0xff]  ;;  %v362_v12 = vld [vmem:[#allocation8 + $0xe8] sm:$0xff] }
  0x67   :  { %v810_v46 = vpack.c.bf16 %v339_v45, %v337_v44  ;;  %v364_v13 = vld [vmem:[#allocation8 + $0xf8] sm:$0xff]  ;;  %v361_v15 = vld [vmem:[#allocation8 + $0xe0] sm:$0xff]  ;;  %v367_v21 = vld [vmem:[#allocation8 + $0x110] sm:$0xff] }
  0x68   :  { %v832_v14 = vpack.c.bf16 %v364_v13, %v362_v12  ;;  %v368_v19 = vld [vmem:[#allocation8 + $0x118] sm:$0xff]  ;;  %v365_v20 = vld [vmem:[#allocation8 + $0x100] sm:$0xff]  ;;  %v375_v35 = vld [vmem:[#allocation8 + $0x150] sm:$0xff] }
  0x69   :  { %771 = vmatpush1.bf16.msra.mxu0 %v770_v50  ;;  %811 = vmatpush1.bf16.msra.mxu1 %v810_v46  ;;  %v343_v50 = vld [vmem:[#allocation8 + $0x50] sm:$0xff]  ;;  %v372_v24 = vld [vmem:[#allocation8 + $0x138] sm:$0xff]  ;;  %v838_v25 = vpack.c.bf16 %v367_v21, %v365_v20  ;;  %v369_v27 = vld [vmem:[#allocation8 + $0x120] sm:$0xff] }
  0x6a   :  { %773 = vmatprep.subr.bf16.mxu0 %v772_v51  ;;  %813 = vmatprep.subr.bf16.mxu1 %v812_v49  ;;  %v376_v30 = vld [vmem:[#allocation8 + $0x158] sm:$0xff]  ;;  %v373_v34 = vld [vmem:[#allocation8 + $0x140] sm:$0xff]  ;;  %v378_v36 = vld [vmem:[#allocation8 + $0x168] sm:$0xff] }
  0x6b   :  { %v380_v37 = vld [vmem:[#allocation8 + $0x178] sm:$0xff]  ;;  %v846_v38 = vpack.c.bf16 %v375_v35, %v373_v34  ;;  %v377_v40 = vld [vmem:[#allocation8 + $0x160] sm:$0xff]  ;;  %v379_v42 = vld [vmem:[#allocation8 + $0x170] sm:$0xff] }
  0x6c   :  { %v848_v39 = vpack.c.bf16 %v380_v37, %v378_v36  ;;  %v382_v43 = vld [vmem:[#allocation8 + $0x188] sm:$0xff]  ;;  %v384_v44 = vld [vmem:[#allocation8 + $0x198] sm:$0xff]  ;;  %v850_v45 = vpack.c.bf16 %v379_v42, %v377_v40  ;;  %v381_v47 = vld [vmem:[#allocation8 + $0x180] sm:$0xff] }
  0x6d   :  { %775 = vmatpush1.bf16.msra.mxu0 %v774_v56  ;;  %v347_v56 = vld [vmem:[#allocation8 + $0x70] sm:$0xff]  ;;  %v852_v46 = vpack.c.bf16 %v384_v44, %v382_v43  ;;  %v386_v49 = vld [vmem:[#allocation8 + $0x1a8] sm:$0xff]  ;;  %v385_v52 = vld [vmem:[#allocation8 + $0x1a0] sm:$0xff] }
  0x6e   :  { %777 = vmatprep.subr.bf16.mxu0 %v776_v57  ;;  %v818_v57 = vpack.c.bf16 %v347_v56, %v345_v55  ;;  %v383_v48 = vld [vmem:[#allocation8 + $0x190] sm:$0xff]  ;;  %v392_v55 = vld [vmem:[#allocation8 + $0x1d8] sm:$0xff]  ;;  %v389_v58 = vld [vmem:[#allocation8 + $0x1c0] sm:$0xff] }
  0x6f   :  { %v387_v53 = vld [vmem:[#allocation8 + $0x1b0] sm:$0xff]  ;;  %v393_v0 = vld [vmem:[#allocation8 + $0x1e0] sm:$0xff]  ;;  %v576_v20 = vld [vmem:[#allocation9 + $0x68] sm:$0xff] }
  0x70   :  { %v858_v56 = vpack.c.bf16 %v387_v53, %v385_v52  ;;  %v391_v59 = vld [vmem:[#allocation8 + $0x1d0] sm:$0xff]  ;;  %v563_v6 = vld [vmem:[#allocation9] sm:$0xff]  ;;  %v578_v21 = vld [vmem:[#allocation9 + $0x78] sm:$0xff] }
  0x71   :  { %779 = vmatpush1.bf16.msra.mxu0 %v778_v62  ;;  %v351_v62 = vld [vmem:[#allocation8 + $0x90] sm:$0xff]  ;;  %v586_v34 = vld [vmem:[#allocation9 + $0xb8] sm:$0xff]  ;;  %v583_v37 = vld [vmem:[#allocation9 + $0xa0] sm:$0xff] }
  0x72   :  { %781 = vmatprep.subr.bf16.mxu0 %v780_v63  ;;  %v822_v63 = vpack.c.bf16 %v351_v62, %v349_v61  ;;  %v396_v61 = vld [vmem:[#allocation8 + $0x1f8] sm:$0xff]  ;;  %v862_v62 = vpack.c.bf16 %v391_v59, %v389_v58  ;;  %v395_v1 = vld [vmem:[#allocation8 + $0x1f0] sm:$0xff]  ;;  %v587_v44 = vld [vmem:[#allocation9 + $0xc0] sm:$0xff] }
  0x73   :  { %v565_v7 = vld [vmem:[#allocation9 + $0x10] sm:$0xff]  ;;  %v590_v40 = vld [vmem:[#allocation9 + $0xd8] sm:$0xff] }
  0x74   :  { %v569_v13 = vld [vmem:[#allocation9 + $0x30] sm:$0xff]  ;;  %v598_v52 = vld [vmem:[#allocation9 + $0x118] sm:$0xff] }
  0x75   :  { %783 = vmatpush1.bf16.msra.mxu0 %v782_v4  ;;  %v355_v4 = vld [vmem:[#allocation8 + $0xb0] sm:$0xff]  ;;  %v602_v58 = vld [vmem:[#allocation9 + $0x138] sm:$0xff] }
  0x76   :  { %785 = vmatprep.subr.bf16.mxu0 %v784_v5  ;;  %v826_v5 = vpack.c.bf16 %v355_v4, %v353_v3  ;;  %v564_v3 = vld [vmem:[#allocation9 + $0x8] sm:$0xff]  ;;  %v566_v4 = vld [vmem:[#allocation9 + $0x18] sm:$0xff] }
  0x79   :  { %787 = vmatpush1.bf16.msra.mxu0 %v786_v10  ;;  %v359_v10 = vld [vmem:[#allocation8 + $0xd0] sm:$0xff] }
  0x7a   :  { %789 = vmatprep.subr.bf16.mxu0 %v788_v11  ;;  %v830_v11 = vpack.c.bf16 %v359_v10, %v357_v9  ;;  %v568_v9 = vld [vmem:[#allocation9 + $0x28] sm:$0xff]  ;;  %v570_v10 = vld [vmem:[#allocation9 + $0x38] sm:$0xff] }
  0x7b   :  { %v872_v12 = vpack.c.bf16 %v570_v10, %v568_v9  ;;  %v607_v9 = vld [vmem:[#allocation9 + $0x160] sm:$0xff]  ;;  %v609_v10 = vld [vmem:[#allocation9 + $0x170] sm:$0xff] }
  0x7d   :  { %791 = vmatpush1.bf16.msra.mxu0 %v790_v16  ;;  %v363_v16 = vld [vmem:[#allocation8 + $0xf0] sm:$0xff] }
  0x7e   :  { %793 = vmatprep.subr.bf16.mxu0 %v792_v17  ;;  %v366_v17 = vld [vmem:[#allocation8 + $0x108] sm:$0xff]  ;;  %v834_v18 = vpack.c.bf16 %v363_v16, %v361_v15  ;;  %v574_v15 = vld [vmem:[#allocation9 + $0x58] sm:$0xff] }
  0x81   :  { %795 = vmatpush1.bf16.msra.mxu0 %v794_v22  ;;  %v836_v22 = vpack.c.bf16 %v368_v19, %v366_v17  ;;  %v573_v19 = vld [vmem:[#allocation9 + $0x50] sm:$0xff] }
  0x82   :  { %797 = vmatprep.subr.bf16.mxu0 %v796_v23  ;;  %v370_v23 = vld [vmem:[#allocation8 + $0x128] sm:$0xff] }
  0x83   :  { %v840_v26 = vpack.c.bf16 %v372_v24, %v370_v23  ;;  %v880_v23 = vpack.c.bf16 %v578_v21, %v576_v20  ;;  %v575_v24 = vld [vmem:[#allocation9 + $0x60] sm:$0xff] }
  0x84   :  { %v615_v21 = vld [vmem:[#allocation9 + $0x1a0] sm:$0xff] }
  0x85   :  { %799 = vmatpush1.bf16.msra.mxu0 %v798_v28  ;;  %v371_v28 = vld [vmem:[#allocation8 + $0x130] sm:$0xff] }
  0x86   :  { %801 = vmatprep.subr.bf16.mxu0 %v800_v29  ;;  %v374_v29 = vld [vmem:[#allocation8 + $0x148] sm:$0xff]  ;;  %v842_v31 = vpack.c.bf16 %v371_v28, %v369_v27  ;;  %v582_v27 = vld [vmem:[#allocation9 + $0x98] sm:$0xff] }
  0x89   :  { %803 = vmatpush1.bf16.msra.mxu0 %v802_v32  ;;  %v844_v32 = vpack.c.bf16 %v376_v30, %v374_v29  ;;  %v579_v30 = vld [vmem:[#allocation9 + $0x80] sm:$0xff] }
  0x8c   :  { %212 = vmatmul.mubr.f32.vlgmr.msra.gmra.mrb[0].mxu0 %v1169_v33 }
  0x8d   :  { %710 = vmatprep.mubr.f32.mxu0 %v1166_v41  ;;  %v341_v41 = vld [vmem:[#allocation8 + $0x40] sm:$0xff] }
  0x8e   :  { %v814_v51 = vpack.c.bf16 %v343_v50, %v341_v41  ;;  %v388_v41 = vld [vmem:[#allocation8 + $0x1b8] sm:$0xff]  ;;  %v854_v50 = vpack.c.bf16 %v383_v48, %v381_v47 }
  0x8f   :  { %v594_v47 = vld [vmem:[#allocation9 + $0xf8] sm:$0xff] }
  0x90   :  { %815 = vmatpush1.bf16.msra.mxu1 %v814_v51  ;;  %v856_v51 = vpack.c.bf16 %v388_v41, %v386_v49  ;;  %v591_v41 = vld [vmem:[#allocation9 + $0xe0] sm:$0xff] }
  0x91   :  { %817 = vmatprep.subr.bf16.mxu1 %v816_v54  ;;  %v390_v54 = vld [vmem:[#allocation8 + $0x1c8] sm:$0xff] }
  0x94   :  { %819 = vmatpush1.bf16.msra.mxu1 %v818_v57  ;;  %v860_v57 = vpack.c.bf16 %v392_v55, %v390_v54  ;;  %v595_v55 = vld [vmem:[#allocation9 + $0x100] sm:$0xff] }
  0x95   :  { %821 = vmatprep.subr.bf16.mxu1 %v820_v60  ;;  %v394_v60 = vld [vmem:[#allocation8 + $0x1e8] sm:$0xff] }
  0x98   :  { %823 = vmatpush1.bf16.msra.mxu1 %v822_v63  ;;  %v864_v63 = vpack.c.bf16 %v396_v61, %v394_v60  ;;  %v599_v61 = vld [vmem:[#allocation9 + $0x120] sm:$0xff] }
  0x99   :  { %825 = vmatprep.subr.bf16.mxu1 %v824_v2  ;;  %v866_v2 = vpack.c.bf16 %v395_v1, %v393_v0  ;;  %v606_v0 = vld [vmem:[#allocation9 + $0x158] sm:$0xff] }
  0x9c   :  { %827 = vmatpush1.bf16.msra.mxu1 %v826_v5  ;;  %v868_v5 = vpack.c.bf16 %v566_v4, %v564_v3  ;;  %v603_v3 = vld [vmem:[#allocation9 + $0x140] sm:$0xff]  ;;  %v605_v4 = vld [vmem:[#allocation9 + $0x150] sm:$0xff] }
  0x9d   :  { %829 = vmatprep.subr.bf16.mxu1 %v828_v8  ;;  %v870_v8 = vpack.c.bf16 %v565_v7, %v563_v6  ;;  %v610_v6 = vld [vmem:[#allocation9 + $0x178] sm:$0xff]  ;;  %v910_v7 = vpack.c.bf16 %v605_v4, %v603_v3 }
  0x9e   :  { %869 = vmatprep.subr.bf16.mxu0 %v868_v5  ;;  %v608_v5 = vld [vmem:[#allocation9 + $0x168] sm:$0xff] }
  0x9f   :  { %871 = vmatpush1.bf16.msra.mxu0 %v870_v8  ;;  %v912_v8 = vpack.c.bf16 %v610_v6, %v608_v5 }
  0xa0   :  { %831 = vmatpush1.bf16.msra.mxu1 %v830_v11  ;;  %v567_v11 = vld [vmem:[#allocation9 + $0x20] sm:$0xff]  ;;  %873 = vmatprep.subr.bf16.mxu0 %v872_v12  ;;  %v614_v12 = vld [vmem:[#allocation9 + $0x198] sm:$0xff] }
  0xa1   :  { %833 = vmatprep.subr.bf16.mxu1 %v832_v14  ;;  %v572_v14 = vld [vmem:[#allocation9 + $0x48] sm:$0xff]  ;;  %v874_v16 = vpack.c.bf16 %v569_v13, %v567_v11  ;;  %v914_v13 = vpack.c.bf16 %v609_v10, %v607_v9  ;;  %v1072_v10 = vmov 1983009808  }
  0xa2   :  { %v876_v17 = vpack.c.bf16 %v574_v15, %v572_v14  ;;  %v612_v11 = vld [vmem:[#allocation9 + $0x188] sm:$0xff]  ;;  %v611_v15 = vld [vmem:[#allocation9 + $0x180] sm:$0xff] }
  0xa3   :  { %875 = vmatpush1.bf16.msra.mxu0 %v874_v16  ;;  %v916_v14 = vpack.c.bf16 %v614_v12, %v612_v11  ;;  %v613_v16 = vld [vmem:[#allocation9 + $0x190] sm:$0xff]  ;;  %v261_v11 = vunpack.c.l.s4 %v1072_v10  ;;  %v263_v12 = vlaneseq }
  0xa4   :  { %835 = vmatpush1.bf16.msra.mxu1 %v834_v18  ;;  %v571_v18 = vld [vmem:[#allocation9 + $0x40] sm:$0xff]  ;;  %877 = vmatprep.subr.bf16.mxu0 %v876_v17  ;;  %v616_v17 = vld [vmem:[#allocation9 + $0x1a8] sm:$0xff] }
  0xa5   :  { %837 = vmatprep.subr.bf16.mxu1 %v836_v22  ;;  %v878_v22 = vpack.c.bf16 %v573_v19, %v571_v18  ;;  %v618_v18 = vld [vmem:[#allocation9 + $0x1b8] sm:$0xff]  ;;  %v918_v19 = vpack.c.bf16 %v613_v16, %v611_v15 }
  0xa6   :  { %v920_v20 = vpack.c.bf16 %v618_v18, %v616_v17 }
  0xa7   :  { %879 = vmatpush1.bf16.msra.mxu0 %v878_v22  ;;  %v617_v22 = vld [vmem:[#allocation9 + $0x1b0] sm:$0xff] }
  0xa8   :  { %839 = vmatpush1.bf16.msra.mxu1 %v838_v25  ;;  %v577_v25 = vld [vmem:[#allocation9 + $0x70] sm:$0xff]  ;;  %881 = vmatprep.subr.bf16.mxu0 %v880_v23  ;;  %v620_v23 = vld [vmem:[#allocation9 + $0x1c8] sm:$0xff] }
  0xa9   :  { %841 = vmatprep.subr.bf16.mxu1 %v840_v26  ;;  %v580_v26 = vld [vmem:[#allocation9 + $0x88] sm:$0xff]  ;;  %v882_v28 = vpack.c.bf16 %v577_v25, %v575_v24  ;;  %v622_v24 = vld [vmem:[#allocation9 + $0x1d8] sm:$0xff]  ;;  %v922_v25 = vpack.c.bf16 %v617_v22, %v615_v21 }
  0xaa   :  { %v884_v29 = vpack.c.bf16 %v582_v27, %v580_v26  ;;  %v924_v26 = vpack.c.bf16 %v622_v24, %v620_v23  ;;  %v619_v27 = vld [vmem:[#allocation9 + $0x1c0] sm:$0xff] }
  0xab   :  { %883 = vmatpush1.bf16.msra.mxu0 %v882_v28  ;;  %v621_v28 = vld [vmem:[#allocation9 + $0x1d0] sm:$0xff] }
  0xac   :  { %843 = vmatpush1.bf16.msra.mxu1 %v842_v31  ;;  %v581_v31 = vld [vmem:[#allocation9 + $0x90] sm:$0xff]  ;;  %885 = vmatprep.subr.bf16.mxu0 %v884_v29  ;;  %v624_v29 = vld [vmem:[#allocation9 + $0x1e8] sm:$0xff] }
  0xad   :  { %845 = vmatprep.subr.bf16.mxu1 %v844_v32  ;;  %v584_v32 = vld [vmem:[#allocation9 + $0xa8] sm:$0xff]  ;;  %v886_v35 = vpack.c.bf16 %v581_v31, %v579_v30  ;;  %v626_v30 = vld [vmem:[#allocation9 + $0x1f8] sm:$0xff] }
  0xae   :  { %v888_v36 = vpack.c.bf16 %v586_v34, %v584_v32 }
  0xaf   :  { %887 = vmatpush1.bf16.msra.mxu0 %v886_v35  ;;  %v926_v35 = vpack.c.bf16 %v621_v28, %v619_v27 }
  0xb0   :  { %847 = vmatpush1.bf16.msra.mxu1 %v846_v38  ;;  %v585_v38 = vld [vmem:[#allocation9 + $0xb0] sm:$0xff]  ;;  %889 = vmatprep.subr.bf16.mxu0 %v888_v36 }
  0xb1   :  { %849 = vmatprep.subr.bf16.mxu1 %v848_v39  ;;  %v588_v39 = vld [vmem:[#allocation9 + $0xc8] sm:$0xff]  ;;  %v890_v42 = vpack.c.bf16 %v585_v38, %v583_v37  ;;  %v928_v37 = vpack.c.bf16 %v626_v30, %v624_v29  ;;  %v623_v38 = vld [vmem:[#allocation9 + $0x1e0] sm:$0xff] }
  0xb2   :  { %v892_v43 = vpack.c.bf16 %v590_v40, %v588_v39  ;;  %v625_v39 = vld [vmem:[#allocation9 + $0x1f0] sm:$0xff] }
  0xb3   :  { %891 = vmatpush1.bf16.msra.mxu0 %v890_v42 }
  0xb4   :  { %851 = vmatpush1.bf16.msra.mxu1 %v850_v45  ;;  %v589_v45 = vld [vmem:[#allocation9 + $0xd0] sm:$0xff]  ;;  %893 = vmatprep.subr.bf16.mxu0 %v892_v43 }
  0xb5   :  { %853 = vmatprep.subr.bf16.mxu1 %v852_v46  ;;  %v592_v46 = vld [vmem:[#allocation9 + $0xe8] sm:$0xff]  ;;  %v894_v48 = vpack.c.bf16 %v589_v45, %v587_v44  ;;  %v930_v44 = vpack.c.bf16 %v625_v39, %v623_v38 }
  0xb6   :  { %v896_v49 = vpack.c.bf16 %v594_v47, %v592_v46 }
  0xb7   :  { %895 = vmatpush1.bf16.msra.mxu0 %v894_v48 }
  0xb8   :  { %855 = vmatpush1.bf16.msra.mxu1 %v854_v50  ;;  %v593_v50 = vld [vmem:[#allocation9 + $0xf0] sm:$0xff]  ;;  %897 = vmatprep.subr.bf16.mxu0 %v896_v49 }
  0xb9   :  { %857 = vmatprep.subr.bf16.mxu1 %v856_v51  ;;  %v596_v51 = vld [vmem:[#allocation9 + $0x108] sm:$0xff]  ;;  %v898_v53 = vpack.c.bf16 %v593_v50, %v591_v41 }
  0xba   :  { %v900_v54 = vpack.c.bf16 %v598_v52, %v596_v51 }
  0xbb   :  { %899 = vmatpush1.bf16.msra.mxu0 %v898_v53 }
  0xbc   :  { %859 = vmatpush1.bf16.msra.mxu1 %v858_v56  ;;  %v597_v56 = vld [vmem:[#allocation9 + $0x110] sm:$0xff]  ;;  %901 = vmatprep.subr.bf16.mxu0 %v900_v54 }
  0xbd   :  { %861 = vmatprep.subr.bf16.mxu1 %v860_v57  ;;  %v600_v57 = vld [vmem:[#allocation9 + $0x128] sm:$0xff]  ;;  %v902_v59 = vpack.c.bf16 %v597_v56, %v595_v55 }
  0xbe   :  { %v904_v60 = vpack.c.bf16 %v602_v58, %v600_v57 }
  0xbf   :  { %903 = vmatpush1.bf16.msra.mxu0 %v902_v59 }
  0xc0   :  { %863 = vmatpush1.bf16.msra.mxu1 %v862_v62  ;;  %v601_v62 = vld [vmem:[#allocation9 + $0x130] sm:$0xff]  ;;  %905 = vmatprep.subr.bf16.mxu0 %v904_v60 }
  0xc1   :  { %865 = vmatprep.subr.bf16.mxu1 %v864_v63  ;;  %v604_v63 = vld [vmem:[#allocation9 + $0x148] sm:$0xff]  ;;  %v906_v1 = vpack.c.bf16 %v601_v62, %v599_v61 }
  0xc3   :  { %907 = vmatpush1.bf16.msra.mxu0 %v906_v1 }
  0xc4   :  { %867 = vmatpush1.bf16.msra.mxu1 %v866_v2  ;;  %v908_v2 = vpack.c.bf16 %v606_v0, %v604_v63 }
  0xc6   :  { %909 = vmatprep.subr.bf16.mxu0 %v908_v2 }
  0xc7   :  { %911 = vmatpush1.bf16.msra.mxu0 %v910_v7 }
  0xc8   :  { %913 = vmatprep.subr.bf16.mxu0 %v912_v8 }
  0xcb   :  { %915 = vmatpush1.bf16.msra.mxu0 %v914_v13  ;;  %v262_v13 = vunpack.c.0.s8 %v261_v11 }
  0xcc   :  { %917 = vmatprep.subr.bf16.mxu0 %v916_v14  ;;  %v1184_v14 = vshrl.u32 %v263_v12, 7 }
  0xce   :  { %v265_v16 = vsub.s32 %v262_v13, %v1184_v14  ;;  %v1191_v21 = vsub.s32 0, %v1184_v14  ;;  %v1194_v22 = vsub.s32 2, %v1184_v14  ;;  %v1203_v38 = vsub.s32 1, %v1184_v14 }
  0xcf   :  { %919 = vmatpush1.bf16.msra.mxu0 %v918_v19  ;;  %v218_v19 = vld [vmem:[%s1244_s2] sm:$0xf]  ;;  %v312_v39 = vsub.s32 3, %v1184_v14 }
  0xd0   :  { %921 = vmatprep.subr.bf16.mxu0 %v920_v20 }
  0xd3   :  { %923 = vmatpush1.bf16.msra.mxu0 %v922_v25 }
  0xd4   :  { %925 = vmatprep.subr.bf16.mxu0 %v924_v26 }
  0xd7   :  { %927 = vmatpush1.bf16.msra.mxu0 %v926_v35 }
  0xd8   :  { %929 = vmatprep.subr.bf16.mxu0 %v928_v37 }
  0xdb   :  { %931 = vmatpush1.bf16.msra.mxu0 %v930_v44 }
  0xde   :  { %711 = vmatmul.mubr.f32.vlgmr.msra.gmra.mrb[2].mxu0 %v1169_v33 }
 0x15f   :  { %v1173_v31 = vpop.f32.mrb[0].mxu0 }
 0x160   :  { %v219_v32 = vrot.slane %v1173_v31, 4  ;;  %v1176_v34 = vpop.f32.mrb[1].mxu0 }
 0x161   :  { %v225_v36 = vrot.slane %v1176_v34, 4 }
 0x162   :  { %v220_v40 = vadd.f32 %v219_v32, %v1173_v31 }
 0x163   :  { %v226_v42 = vadd.f32 %v225_v36, %v1176_v34 }
 0x164   :  { %v221_v43 = vrot.slane %v220_v40, 2 }
 0x165   :  { %v227_v45 = vrot.slane %v226_v42, 2 }
 0x166   :  { %v222_v46 = vadd.f32 %v221_v43, %v220_v40 }
 0x167   :  { %v228_v47 = vadd.f32 %v227_v45, %v226_v42 }
 0x168   :  { %v223_v48 = vrot.slane %v222_v46, 1 }
 0x169   :  { %v229_v49 = vrot.slane %v228_v47, 1 }
 0x16a   :  { %v224_v41 = vadd.f32 %v223_v48, %v222_v46 }
 0x16b   :  { %v230_v50 = vadd.f32 %v229_v49, %v228_v47 }
 0x16c   :  { %v231_v51 = vmul.f32 0.125, %v224_v41 }
 0x16d   :  { %v232_v52 = vmul.f32 0.125, %v230_v50 }
 0x16e   :  { %v233_v53 = vsub.f32 %v1173_v31, %v231_v51 }
 0x16f   :  { %v234_v54 = vsub.f32 %v1176_v34, %v232_v52 }
 0x170   :  { %v235_v55 = vmul.f32 %v233_v53, %v233_v53 }
 0x171   :  { %v236_v56 = vmul.f32 %v234_v54, %v234_v54 }
 0x172   :  { %v237_v57 = vrot.slane %v235_v55, 4 }
 0x173   :  { %v243_v58 = vrot.slane %v236_v56, 4 }
 0x174   :  { %v238_v59 = vadd.f32 %v237_v57, %v235_v55 }
 0x175   :  { %v244_v60 = vadd.f32 %v243_v58, %v236_v56 }
 0x176   :  { %v239_v61 = vrot.slane %v238_v59, 2 }
 0x177   :  { %v245_v62 = vrot.slane %v244_v60, 2 }
 0x178   :  { %v240_v63 = vadd.f32 %v239_v61, %v238_v59 }
 0x179   :  { %v246_v0 = vadd.f32 %v245_v62, %v244_v60 }
 0x17a   :  { %v241_v1 = vrot.slane %v240_v63, 1 }
 0x17b   :  { %v247_v2 = vrot.slane %v246_v0, 1 }
 0x17c   :  { %v242_v3 = vadd.f32 %v241_v1, %v240_v63 }
 0x17d   :  { %v248_v33 = vadd.f32 %v247_v2, %v246_v0 }
 0x17e   :  { %v249_v4 = vmul.f32 0.125, %v242_v3 }
 0x17f   :  { %v250_v5 = vmul.f32 0.125, %v248_v33 }
 0x180   :  { %v251_v6 = vmax.f32 %v249_v4, 0.0 }
 0x181   :  { %v252_v7 = vmax.f32 %v250_v5, 0.0 }
 0x182   :  { %v253_v8 = vadd.f32 1e-05, %v251_v6 }
 0x183   :  { %v254_v9 = vadd.f32 1e-05, %v252_v7 }
 0x184   :  { %940 = vrsqrt.f32 %v253_v8 }
 0x185   :  { %942 = vrsqrt.f32 %v254_v9 }
 0x18e   :  { %v941_v15 = vpop.eup %940 }
 0x18f   :  { %v943_v17 = vpop.eup %942 }
 0x190   :  { %v259_v18 = vcombine.low %v941_v15, %v943_v17 }
 0x192   :  { %v266_v20 = vrot.slane %v259_v18, %v265_v16 }
 0x194   :  { %v268_v23 = vmul.f32 %v266_v20, %v218_v19 }
 0x196   :  { %v273_v24 = vrot.slane %v268_v23, %v1191_v21  ;;  %v277_v25 = vrot.slane %v268_v23, %v1194_v22 }
 0x198   :  { %v280_v26 = vmul.f32 %v273_v24, %v231_v51  ;;  %v281_v27 = vmul.f32 %v277_v25, %v232_v52  ;;  %v302_v28 = vrot.slane %v277_v25, %v1191_v21  ;;  %v298_v29 = vrot.slane %v273_v24, %v1191_v21 }
 0x19a   :  { %v284_v30 = vcombine.low %v280_v26, %v281_v27  ;;  %v304_v32 = vmul.f32 %v302_v28, %v1176_v34  ;;  %v303_v35 = vmul.f32 %v298_v29, %v1173_v31  ;;  %v330_v27 = vld [vmem:[%s1246_s4] sm:$0x77]  ;;  %v518_v29 = vsub.s32 4, %v1184_v14  ;;  %s1073_s4 = smov [#allocation11]  }
 0x19b   :  { %s729_s1 = sshll.u32 %s1073_s4, 4  ;;  %s730_s1 = int_to_ptr.vmem [resolvable:$true] %s729_s1 }
 0x19c   :  { %v291_v36 = vrot.slane %v284_v30, %v265_v16  ;;  %s1036_s22 = scalar_lea.vmem %s730_s1, 256  ;;  %p1041_p5 = scmp.lt.s32.totalorder %s730_s1, %s730_s1 }
 0x19d   :  { %p1037_p4 = scmp.ne.s32.totalorder %s730_s1, %s1036_s22  ;;  %p1042_p6 = scmp.lt.s32.totalorder %s1036_s22, %s1036_s22 }
 0x19e   :  { %v292_v37 = vrot.slane %v291_v36, 7  ;;  %v634_v36 = vsub.s32 6, %v1184_v14 }
 0x19f   :  { %p1043_p7 = por %p1042_p6, %p1041_p5 }
 0x1a0   :  { %v294_v40 = vsub.f32 %v218_v19, %v292_v37 }
 0x1a1   :  { %p1044_p8 = pnand %p1043_p7, %p1037_p4 }
 0x1a2   :  { %v313_v42 = vrot.slane %v294_v40, %v312_v39  ;;  %v309_v43 = vrot.slane %v294_v40, %v1203_v38 }
 0x1a4   :  { %v323_v44 = vrot.slane %v313_v42, %v1203_v38  ;;  %v319_v45 = vrot.slane %v309_v43, %v1203_v38  ;;  %v631_v43 = vrot.slane %v330_v27, %v1194_v22 }
 0x1a6   :  { %v325_v46 = vadd.f32 %v323_v44, %v304_v32  ;;  %v324_v47 = vadd.f32 %v319_v45, %v303_v35 }
 0x1a8   :  { %v327_v34 = vmax.f32 %v325_v46, 0.0  ;;  %v326_v48 = vmax.f32 %v324_v47, 0.0  ;;  %v635_v47 = vrot.slane %v330_v27, %v634_v36 }
 0x1aa   :  { %461 = vmatprep.mubr.f32.mxu1 %v327_v34 }
 0x1ab   :  { %462 = vmatmul.mubr.f32.vlgmr.msra.gmra.mrb[0].mxu1 %v326_v48  ;;  %v547_v48 = vsub.s32 5, %v1184_v14 }
 0x1b1   :  { %v1209_v31 = vpop.f32.mrb[2].mxu0 }
 0x1b2   :  { %v1211_v49 = vpop.f32.mrb[3].mxu0 }
 0x27e   :  { %v463_v41 = vpop.f32.mrb[0].mxu1 }
 0x27f   :  { %v468_v50 = vrot.slane %v463_v41, 4  ;;  %v465_v51 = vpop.f32.mrb[1].mxu1 }
 0x280   :  { %v474_v52 = vrot.slane %v465_v51, 4 }
 0x281   :  { %v469_v53 = vadd.f32 %v468_v50, %v463_v41 }
 0x282   :  { %v475_v54 = vadd.f32 %v474_v52, %v465_v51  ;;  %v641_v52 = vrot.slane %v631_v43, %v1194_v22 }
 0x283   :  { %v470_v55 = vrot.slane %v469_v53, 2 }
 0x284   :  { %v476_v56 = vrot.slane %v475_v54, 2 }
 0x285   :  { %v471_v57 = vadd.f32 %v470_v55, %v469_v53  ;;  %v645_v53 = vrot.slane %v635_v47, %v1194_v22 }
 0x286   :  { %v477_v58 = vadd.f32 %v476_v56, %v475_v54 }
 0x287   :  { %v472_v59 = vrot.slane %v471_v57, 1 }
 0x288   :  { %v478_v60 = vrot.slane %v477_v58, 1 }
 0x289   :  { %v473_v61 = vadd.f32 %v472_v59, %v471_v57 }
 0x28a   :  { %v479_v62 = vadd.f32 %v478_v60, %v477_v58 }
 0x28b   :  { %v480_v63 = vmul.f32 0.125, %v473_v61 }
 0x28c   :  { %v481_v0 = vmul.f32 0.125, %v479_v62 }
 0x28d   :  { %v482_v1 = vsub.f32 %v463_v41, %v480_v63 }
 0x28e   :  { %v483_v2 = vsub.f32 %v465_v51, %v481_v0 }
 0x28f   :  { %v484_v3 = vmul.f32 %v482_v1, %v482_v1 }
 0x290   :  { %v485_v33 = vmul.f32 %v483_v2, %v483_v2 }
 0x291   :  { %v486_v4 = vrot.slane %v484_v3, 4 }
 0x292   :  { %v492_v5 = vrot.slane %v485_v33, 4 }
 0x293   :  { %v487_v6 = vadd.f32 %v486_v4, %v484_v3 }
 0x294   :  { %v493_v7 = vadd.f32 %v492_v5, %v485_v33 }
 0x295   :  { %v488_v8 = vrot.slane %v487_v6, 2 }
 0x296   :  { %v494_v9 = vrot.slane %v493_v7, 2 }
 0x297   :  { %v489_v10 = vadd.f32 %v488_v8, %v487_v6 }
 0x298   :  { %v495_v11 = vadd.f32 %v494_v9, %v493_v7 }
 0x299   :  { %v490_v12 = vrot.slane %v489_v10, 1 }
 0x29a   :  { %v496_v13 = vrot.slane %v495_v11, 1 }
 0x29b   :  { %v491_v15 = vadd.f32 %v490_v12, %v489_v10 }
 0x29c   :  { %v497_v16 = vadd.f32 %v496_v13, %v495_v11 }
 0x29d   :  { %v498_v17 = vmul.f32 0.125, %v491_v15 }
 0x29e   :  { %v499_v18 = vmul.f32 0.125, %v497_v16 }
 0x29f   :  { %v500_v19 = vmax.f32 %v498_v17, 0.0 }
 0x2a0   :  { %v501_v20 = vmax.f32 %v499_v18, 0.0 }
 0x2a1   :  { %v502_v23 = vadd.f32 1e-05, %v500_v19 }
 0x2a2   :  { %v503_v24 = vadd.f32 1e-05, %v501_v20 }
 0x2a3   :  { %944 = vrsqrt.f32 %v502_v23 }
 0x2a4   :  { %946 = vrsqrt.f32 %v503_v24 }
 0x2ad   :  { %v945_v25 = vpop.eup %944 }
 0x2ae   :  { %v947_v26 = vpop.eup %946 }
 0x2af   :  { %v508_v28 = vcombine.low %v945_v25, %v947_v26 }
 0x2b1   :  { %v510_v30 = vmul.f32 %v508_v28, %v330_v27 }
 0x2b3   :  { %v515_v32 = vrot.slane %v510_v30, %v1191_v21  ;;  %v519_v35 = vrot.slane %v510_v30, %v518_v29 }
 0x2b5   :  { %v522_v37 = vmul.f32 %v515_v32, %v480_v63  ;;  %v523_v39 = vmul.f32 %v519_v35, %v481_v0  ;;  %v537_v40 = vrot.slane %v519_v35, %v1191_v21  ;;  %v533_v42 = vrot.slane %v515_v32, %v1191_v21 }
 0x2b6   :  { %v713_v21 = vadd.f32 %v1209_v31, %v641_v52 }
 0x2b7   :  { %v526_v44 = vcombine.low %v522_v37, %v523_v39  ;;  %v539_v45 = vmul.f32 %v537_v40, %v465_v51  ;;  %v538_v46 = vmul.f32 %v533_v42, %v463_v41  ;;  %v715_v41 = vadd.f32 %v1211_v49, %v645_v53 }
 0x2b9   :  { %v527_v34 = vrot.slane %v526_v44, 7 }
 0x2bb   :  { %v529_v50 = vsub.f32 %v330_v27, %v527_v34 }
 0x2bd   :  { %v544_v54 = vrot.slane %v529_v50, %v1203_v38  ;;  %v548_v55 = vrot.slane %v529_v50, %v547_v48 }
 0x2bf   :  { %v554_v56 = vrot.slane %v544_v54, %v1203_v38  ;;  %v558_v57 = vrot.slane %v548_v55, %v1203_v38 }
 0x2c1   :  { %v559_v51 = vadd.f32 %v554_v56, %v538_v46  ;;  %v560_v58 = vadd.f32 %v558_v57, %v539_v45 }
 0x2c3   :  { %v717_v14 = vadd.f32 %v713_v21, %v559_v51  ;;  %v718_v59 = vadd.f32 %v715_v41, %v560_v58 }
 0x2c5   :  { %v719_v60 = vmax.f32 %v717_v14, 0.0  ;;  %v720_v61 = vmax.f32 %v718_v59, 0.0 }
 0x2c7   :  { %721 = vst [vmem:[#allocation11] sm:$0xff] %v719_v60  ;;  %722 = vst [vmem:[#allocation11 + $0x8] sm:$0xff] %v720_v61 }
 0x2c8   :  { %1047 = shalt.err (!%p1044_p8)
}
 0x2c9   :  { %s1048_s25 = scalar_lea.hbm %s1248_s6, 256 }
 0x2ca   :  { %p1049_p9 = scmp.ne.s32.totalorder %s1248_s6, %s1048_s25  ;;  %p1052_p10 = scmp.lt.u32.totalorder %s1048_s25, %s1248_s6 }
 0x2cc   :  { %p1054_p11 = pnand %p1052_p10, %p1049_p9 }
 0x2ce   :  { %1057 = shalt.err (!%p1054_p11)
}
 0x2cf   :  { %732 = dma.vmem_to_hbm [thread:$0]  %s730_s1, 256, %s1248_s6, [#allocation5]  }
 0x2d0   :  { %1064 = dma.done.wait [#allocation5], 256  }
 0x2d1   :  { %1065 = vsyncadd [#allocation5], 4294967040 }
 0x2d2   :  { %736 = vsyncpa [#allocation4], 1 }
 0x2d3   :  { %737 = vsyncpa [#allocation7], 1 }
 0x2d4   :  { %738 = vsyncpa [#allocation10], 1 }
 0x2d5   :  { %739 = vsyncpa [#allocation5], 1 }

</bundles_post_ra>
